<compile_context>
chip_gen: v6e
topology: v6e:2x2x1
jax: 0.10.0
libtpu: 0.0.40
codegen_flags: <defaults>
</compile_context>

<pallas_src>
import math

import jax
import jax.numpy as jnp
from jax.experimental import pallas as pl
from jax.experimental.pallas import tpu as pltpu

A = 15.0
B = 2.0 / 15.0

_INV_A = 1.0 / A
_INV_B = 1.0 / B
_HALF_OVER_B = 0.5 / B  # fuse the 0.5 of atanh with the 1/B scale

_SMALL_BYTES = 256 * 1024          # below this, plain jnp (launch overhead wins)
_DEFAULT_BLOCK_BYTES = 2 * 1024 * 1024  # ~2 MiB block -> ~8 MiB double-buffered


def _atanh_body(x_ref, o_ref, *, approx_recip):
    x = x_ref[...].astype(jnp.float32)
    z = x * _INV_A
    # atanh(z) = 0.5 * log((1 + z) / (1 - z)); log / reciprocal hit the EUP.
    out = _HALF_OVER_B * jnp.log((1.0 + z) * pl.reciprocal(1.0 - z, approx=approx_recip))
    o_ref[...] = out.astype(o_ref.dtype)


def _kernel_exact(x_ref, o_ref):
    _atanh_body(x_ref, o_ref, approx_recip=False)


def _kernel_approx(x_ref, o_ref):
    _atanh_body(x_ref, o_ref, approx_recip=True)


def _reference_jnp(x):
    """Plain-jnp fallback (tiny inputs / ragged tails); f32 compute."""
    return jnp.arctanh(x.astype(jnp.float32) * _INV_A) * _INV_B


def _lane_dense_2d(shape):
    """(rows, cols) with cols % 128 == 0, collapsing trailing dims copy-free.

    Caller guarantees total % 128 == 0.
    """
    total = math.prod(shape)
    cols = 1
    for d in reversed(shape):
        cols *= d
        if cols % 128 == 0:
            if cols <= 4096:
                return total // cols, cols
            break
    # Fallback: flat lane-dense view.
    return total // 128, 128


def _pick_block_rows(rows, cols, itemsize, target_block_bytes):
    """Block rows: multiple of 8 (or == rows), ~target_block_bytes, >= ~4 grid
    steps on mid/large inputs so both v7x TensorCores get balanced work."""
    bytes_per_row = cols * itemsize
    max_by_bytes = max(8, (target_block_bytes // bytes_per_row) // 8 * 8)
    blk = min(rows, max_by_bytes)
    if rows >= 32:
        blk = min(blk, max(8, (rows // 4) // 8 * 8))
    if blk >= rows:
        return rows
    return max(8, (blk // 8) * 8)


def _run_kernel(x2d, out_dtype, target_block_bytes):
    rows, cols = x2d.shape
    itemsize = jnp.dtype(x2d.dtype).itemsize
    blk_rows = _pick_block_rows(rows, cols, itemsize, target_block_bytes)
    grid = (pl.cdiv(rows, blk_rows),)

    # bf16/fp16 output precision hides the ~2^-12 approx-reciprocal error and
    # halves EUP work (the binding unit at the bf16 HBM roofline on v6e/v7x).
    kernel = _kernel_approx if itemsize < 4 else _kernel_exact

    total = rows * cols
    cost = pl.CostEstimate(
        flops=5 * total,
        transcendentals=2 * total,
        bytes_accessed=2 * total * itemsize,
    )

    return pl.pallas_call(
        kernel,
        out_shape=jax.ShapeDtypeStruct((rows, cols), out_dtype),
        grid_spec=pltpu.PrefetchScalarGridSpec(
            num_scalar_prefetch=0,
            grid=grid,
            in_specs=[pl.BlockSpec((blk_rows, cols), lambda i: (i, 0))],
            out_specs=pl.BlockSpec((blk_rows, cols), lambda i: (i, 0)),
        ),
        compiler_params=pltpu.CompilerParams(
            dimension_semantics=("parallel",),
        ),
        cost_estimate=cost,
    )(x2d)


def scaled_arctanh(x, *, target_block_bytes=_DEFAULT_BLOCK_BYTES, force_kernel=False):
    """Applies atanh(x / A) / B elementwise via a Pallas TPU kernel."""
    orig_shape = x.shape
    orig_dtype = x.dtype
    total = x.size
    itemsize = jnp.dtype(orig_dtype).itemsize

    if total == 0:
        return x

    # Tiny inputs: launch/pipeline overhead dominates; let XLA fuse it.
    if (total * itemsize < _SMALL_BYTES) and not force_kernel:
        return _reference_jnp(x).astype(orig_dtype)

    if total % 128 == 0:
        rows, cols = _lane_dense_2d(orig_shape)
        out2d = _run_kernel(x.reshape(rows, cols), orig_dtype, target_block_bytes)
        return out2d.reshape(orig_shape)

    # Ragged total: kernel on the 128-aligned prefix, jnp on the (<128) tail.
    main_len = (total // 128) * 128
    x_flat = x.reshape(-1)
    if main_len == 0:
        return _reference_jnp(x).astype(orig_dtype)
    main2d = x_flat[:main_len].reshape(main_len // 128, 128)
    main_out = _run_kernel(main2d, orig_dtype, target_block_bytes).reshape(-1)
    tail_out = _reference_jnp(x_flat[main_len:]).astype(orig_dtype)
    return jnp.concatenate([main_out, tail_out]).reshape(orig_shape)


if __name__ == "__main__":
    key = jax.random.PRNGKey(0)
    k1, k2 = jax.random.split(key)

    # Aligned NCHW input: H*W = 256 -> copy-free (N*C, 256) factorization.
    # Values kept well inside (-A, A) so atanh is finite.
    x = jax.random.uniform(
        k1, (2, 4, 16, 16), dtype=jnp.float32, minval=-10.0, maxval=10.0
    )
    out = jax.block_until_ready(scaled_arctanh(x, force_kernel=True))
    ref = jnp.arctanh(x / A) / B
    assert out.shape == x.shape and out.dtype == x.dtype
    assert jnp.allclose(out, ref, atol=1e-4, rtol=1e-4)

    # Ragged total (300 elements): kernel on the 128-aligned prefix + jnp tail.
    xr = jax.random.uniform(
        k2, (2, 3, 50), dtype=jnp.float32, minval=-10.0, maxval=10.0
    )
    outr = jax.block_until_ready(scaled_arctanh(xr, force_kernel=True))
    refr = jnp.arctanh(xr / A) / B
    assert outr.shape == xr.shape and outr.dtype == xr.dtype
    assert jnp.allclose(outr, refr, atol=1e-4, rtol=1e-4)

    # bf16 I/O path (approx reciprocal inside the kernel).
    xb = x.astype(jnp.bfloat16)
    outb = jax.block_until_ready(scaled_arctanh(xb, force_kernel=True))
    refb = jnp.arctanh(xb.astype(jnp.float32) / A) / B
    assert outb.shape == xb.shape and outb.dtype == jnp.bfloat16
    assert jnp.allclose(outb.astype(jnp.float32), refb, atol=0.1, rtol=0.05)

    print("KERNEL_OK")
</pallas_src>

<mosaic_0001>
module attributes {stable_mosaic.version = 11 : i64} {
  func.func @_kernel_exact(%arg0: i32, %arg1: memref<8x256xf32, #tpu.memory_space<vmem>>, %arg2: memref<8x256xf32, #tpu.memory_space<vmem>>) attributes {dimension_semantics = [#tpu.dimension_semantics<parallel>], iteration_bounds = array<i64: 1>, scalar_prefetch = 0 : i64, scratch_operands = 0 : i64, tpu.core_type = #tpu.core_type<tc>, window_params = [{transform_indices = @transform_0, window_bounds = array<i64: 8, 256>}, {transform_indices = @transform_1, window_bounds = array<i64: 8, 256>}]} {
    %c0 = arith.constant 0 : index
    %c0_0 = arith.constant 0 : index
    %0 = vector.load %arg1[%c0, %c0_0] : memref<8x256xf32, #tpu.memory_space<vmem>>, vector<8x256xf32>
    %cst = arith.constant 0.0666666701 : f32
    %1 = vector.broadcast %cst : f32 to vector<8x256xf32>
    %2 = arith.mulf %0, %1 : vector<8x256xf32>
    %cst_1 = arith.constant 1.000000e+00 : f32
    %3 = vector.broadcast %cst_1 : f32 to vector<8x256xf32>
    %4 = arith.addf %3, %2 : vector<8x256xf32>
    %cst_2 = arith.constant 1.000000e+00 : f32
    %5 = vector.broadcast %cst_2 : f32 to vector<8x256xf32>
    %6 = arith.subf %5, %2 : vector<8x256xf32>
    %7 = tpu.reciprocal %6 : vector<8x256xf32> -> vector<8x256xf32>
    %8 = arith.mulf %4, %7 : vector<8x256xf32>
    %9 = math.log %8 : vector<8x256xf32>
    %cst_3 = arith.constant 3.750000e+00 : f32
    %10 = vector.broadcast %cst_3 : f32 to vector<8x256xf32>
    %11 = arith.mulf %10, %9 : vector<8x256xf32>
    %c0_4 = arith.constant 0 : index
    %c0_5 = arith.constant 0 : index
    %12 = vector.load %arg2[%c0_4, %c0_5] : memref<8x256xf32, #tpu.memory_space<vmem>>, vector<8x256xf32>
    tpu.vector_store %arg2[%c0_4, %c0_5], %11 {strides = array<i32>} : memref<8x256xf32, #tpu.memory_space<vmem>>, vector<8x256xf32>,
    return
  }
  func.func @transform_0(%arg0: i32) -> (i32, i32) {
    %c0_i32 = arith.constant 0 : i32
    %c0_i32_0 = arith.constant 0 : i32
    return %arg0, %c0_i32 : i32, i32
  }
  func.func @transform_1(%arg0: i32) -> (i32, i32) {
    %c0_i32 = arith.constant 0 : i32
    %c0_i32_0 = arith.constant 0 : i32
    return %arg0, %c0_i32 : i32, i32
  }
}

</mosaic_0001>

<bundles_post_ra>
// kernel: tpu_custom_call.1
= control target key start
LH: loop header
LB: loop body
LE: loop exit
PB: predicated region body
PF: predicated region fallthrough
CT: control target
= control target key end

     0   :  { %6 = vsyncpa [#allocation3], 0  ;;  %s128_s0 = inlined_call_operand.hbm [shape: f32[8,256], index: 0, kind: input, shape index: {}]   ;;  %s129_s1 = inlined_call_operand.hbm [shape: f32[8,256], index: 1, kind: output, shape index: {}]  }
   0x1   :  { %7 = vsyncpa [#allocation4], 0  ;;  %s110_s6 = smov [#allocation2]  }
   0x2   :  { %s14_s7 = sshll.u32 %s110_s6, 4  ;;  %s15_s7 = int_to_ptr.vmem [resolvable:$true] %s14_s7 }
   0x3   :  { %s74_s8 = scalar_lea.vmem %s15_s7, 256  ;;  %p79_p1 = scmp.lt.s32.totalorder %s15_s7, %s15_s7 }
   0x4   :  { %p75_p0 = scmp.ne.s32.totalorder %s15_s7, %s74_s8  ;;  %p80_p2 = scmp.lt.s32.totalorder %s74_s8, %s74_s8 }
   0x6   :  { %p81_p3 = por %p80_p2, %p79_p1 }
   0x8   :  { %p82_p4 = pnand %p81_p3, %p75_p0 }
   0xa   :  { %85 = shalt.err (!%p82_p4)
}
   0xb   :  { %17 = dma.hbm_to_vmem [thread:$0]  %s128_s0, 256, %s15_s7, [#allocation3]  }
   0xc   :  { %106 = dma.done.wait [#allocation3], 256  }
   0xd   :  { %107 = vsyncadd [#allocation3], 4294967040  ;;  %v21_v0 = vld [vmem:[#allocation2] sm:$0xff]  ;;  %v22_v1 = vld [vmem:[#allocation2 + $0x8] sm:$0xff]  ;;  %s111_s0 = smov [#allocation5]  }
   0xe   :  { %v23_v2 = vmul.f32 0.06666667, %v21_v0  ;;  %v24_v3 = vmul.f32 0.06666667, %v22_v1  ;;  %s47_s11 = sshll.u32 %s111_s0, 4  ;;  %s48_s11 = int_to_ptr.vmem [resolvable:$true] %s47_s11 }
   0xf   :  { %s86_s12 = scalar_lea.vmem %s48_s11, 256  ;;  %p91_p6 = scmp.lt.s32.totalorder %s48_s11, %s48_s11 }
  0x10   :  { %v27_v4 = vsub.f32 1.0, %v23_v2  ;;  %v28_v5 = vsub.f32 1.0, %v24_v3  ;;  %v25_v6 = vadd.f32 1.0, %v23_v2  ;;  %v26_v7 = vadd.f32 1.0, %v24_v3  ;;  %p87_p5 = scmp.ne.s32.totalorder %s48_s11, %s86_s12  ;;  %p92_p7 = scmp.lt.s32.totalorder %s86_s12, %s86_s12 }
  0x12   :  { %58 = vrcp.f32 %v27_v4  ;;  %p93_p8 = por %p92_p7, %p91_p6 }
  0x13   :  { %60 = vrcp.f32 %v28_v5 }
  0x14   :  { %p94_p9 = pnand %p93_p8, %p87_p5 }
  0x1f   :  { %v59_v8 = vpop.eup %58 }
  0x20   :  { %v61_v9 = vpop.eup %60  ;;  %v31_v10 = vmul.f32 %v59_v8, %v25_v6 }
  0x21   :  { %v32_v11 = vmul.f32 %v61_v9, %v26_v7 }
  0x22   :  { %62 = vlog2.f32 %v31_v10 }
  0x23   :  { %64 = vlog2.f32 %v32_v11 }
  0x2f   :  { %v63_v12 = vpop.eup %62 }
  0x30   :  { %v65_v13 = vpop.eup %64  ;;  %v34_v14 = vmul.f32 0.6931472, %v63_v12 }
  0x31   :  { %v36_v15 = vmul.f32 0.6931472, %v65_v13 }
  0x32   :  { %v37_v16 = vmul.f32 3.75, %v34_v14 }
  0x33   :  { %v38_v17 = vmul.f32 3.75, %v36_v15 }
  0x34   :  { %39 = vst [vmem:[#allocation5] sm:$0xff] %v37_v16 }
  0x35   :  { %40 = vst [vmem:[#allocation5 + $0x8] sm:$0xff] %v38_v17 }
  0x36   :  { %97 = shalt.err (!%p94_p9)
}
  0x37   :  { %50 = dma.vmem_to_hbm [thread:$0]  %s48_s11, 256, %s129_s1, [#allocation4]  }
  0x38   :  { %108 = dma.done.wait [#allocation4], 256  }
  0x39   :  { %109 = vsyncadd [#allocation4], 4294967040 }
  0x3a   :  { %54 = vsyncpa [#allocation3], 1 }
  0x3b   :  { %55 = vsyncpa [#allocation4], 1 }

</bundles_post_ra>
